<compile_context>
chip_gen: v6e
topology: v6e:2x2x1
jax: 0.10.0
libtpu: 0.0.40
codegen_flags: <defaults>
</compile_context>

<pallas_src>
import functools
import math

import jax
import jax.numpy as jnp
from jax.scipy.special import logsumexp
from jax.experimental import pallas as pl
from jax.experimental.pallas import tpu as pltpu

_HALF_LOG_2PI = 0.5 * math.log(2.0 * math.pi)


def _round_up(x, m):
    return (x + m - 1) // m * m


def _hier_mixture_kernel(z_ref, mu_ref, nhw_ref, a_ref, wpd_ref, swct_ref, out_ref,
                         *, n_dim_mixes, n_overall_mixes):
    """One batch tile of the hierarchical Gaussian-mixture log-density.

    z_ref    : (TB, D)      input rows
    mu_ref   : (M, D)       per-dim-mixture means
    nhw_ref  : (M, D)       -0.5 * exp(-2*log_std)   (negative half precision)
    a_ref    : (M, D)       -log_std - 0.5*log(2*pi)
    wpd_ref  : (O*M, D)     softmax(weights_per_dim over M), row = o*M + m
    swct_ref : (O, C_pad)   softmax(class_weights over O), transposed, lane-padded
                            (padded lanes = 1.0 so the final log stays finite)
    out_ref  : (TB, C_pad)  logsumexp_o( sum_d logsumexp_m(lp + log w) + log cw )
    """
    M, O = n_dim_mixes, n_overall_mixes
    z = z_ref[...].astype(jnp.float32)                       # (TB, D)

    # Per-dim-mixture diagonal-Gaussian log density, per dim (no sum over D yet).
    lp = []
    for m in range(M):
        diff = z - mu_ref[m:m + 1, :]                        # (TB, D)
        lp.append(a_ref[m:m + 1, :] + nhw_ref[m:m + 1, :] * diff * diff)

    # Shared shift for the dim-mixture logsumexp (independent of o):
    #   logsumexp_m(lp_m + log w_om) = mxd + log(sum_m exp(lp_m - mxd) * w_om)
    # sum_m w_om = 1 and exp(lp_m - mxd) <= 1, so the log argument is in (0, 1].
    mxd = lp[0]
    for v in lp[1:]:
        mxd = jnp.maximum(mxd, v)
    e = [jnp.exp(v - mxd) for v in lp]                       # M wide exps, reused for all o

    # Per overall mixture: weighted sum over dim-mixtures, log, then sum dims.
    rpm = []                                                 # list of (TB, 1)
    for o in range(O):
        s = e[0] * wpd_ref[o * M:o * M + 1, :]
        for m in range(1, M):
            s = s + e[m] * wpd_ref[o * M + m:o * M + m + 1, :]
        red = mxd + jnp.log(s)                               # (TB, D)
        rpm.append(jnp.sum(red, axis=-1, keepdims=True))     # (TB, 1)

    # Class reduction: logsumexp_o(rpm_o + log cw_co)
    #   = mxo + log(sum_o exp(rpm_o - mxo) * cw_co), with narrow exps + wide FMAs.
    mxo = rpm[0]
    for v in rpm[1:]:
        mxo = jnp.maximum(mxo, v)
    acc = jnp.exp(rpm[0] - mxo) * swct_ref[0:1, :]           # (TB, C_pad)
    for o in range(1, O):
        acc = acc + jnp.exp(rpm[o] - mxo) * swct_ref[o:o + 1, :]
    out_ref[...] = mxo + jnp.log(acc)


def hierarchical_mixture_log_probs(z, class_means, class_log_stds,
                                   weights_per_dim, class_weights,
                                   *, block_batch=256):
    """z: (B, D) -> (B, C) log densities (logsumexp/logsumexp, sum_dims=True)."""
    B, D = z.shape
    M, D2 = class_means.shape
    O, M2, D3 = weights_per_dim.shape
    C, O2 = class_weights.shape
    assert D == D2 == D3 and M == M2 and O == O2

    # ---- parameter-only math, hoisted out of the kernel (runs once) ----
    ls = class_log_stds.astype(jnp.float32)
    mu = class_means.astype(jnp.float32)
    nhw = -0.5 * jnp.exp(-2.0 * ls)                          # (M, D)
    a = -ls - _HALF_LOG_2PI                                  # (M, D)
    wpd = jax.nn.softmax(weights_per_dim.astype(jnp.float32), axis=1)
    wpd = wpd.reshape(O * M, D)                              # (O*M, D), linear weights
    swc = jax.nn.softmax(class_weights.astype(jnp.float32), axis=1)   # (C, O)

    # Lane-dense output: pad class dim to a multiple of 128 lanes. Padded lanes
    # use weight 1.0 so their log stays finite; they are sliced off below.
    C_pad = _round_up(C, 128)
    swct = jnp.ones((O, C_pad), jnp.float32).at[:, :C].set(swc.T)

    # ---- batch tiling ----
    # VMEM per tile ~ 2*TB*D*4 (double-buffered z) + params + 2*TB*C_pad*4 (out);
    # block_batch=256 fits comfortably within v7x's 64 MiB as well as v6e/v5e.
    tb = _round_up(min(block_batch, _round_up(B, 8)), 8)
    B_pad = _round_up(B, tb)
    if B_pad != B:
        z = jnp.pad(z, ((0, B_pad - B), (0, 0)))

    kernel = functools.partial(_hier_mixture_kernel,
                               n_dim_mixes=M, n_overall_mixes=O)

    out = pl.pallas_call(
        kernel,
        out_shape=jax.ShapeDtypeStruct((B_pad, C_pad), jnp.float32),
        grid=(B_pad // tb,),
        in_specs=[
            pl.BlockSpec((tb, D), lambda i: (i, 0)),          # z: tiled over batch
            pl.BlockSpec((M, D), lambda i: (0, 0)),           # params: VMEM-resident
            pl.BlockSpec((M, D), lambda i: (0, 0)),
            pl.BlockSpec((M, D), lambda i: (0, 0)),
            pl.BlockSpec((O * M, D), lambda i: (0, 0)),
            pl.BlockSpec((O, C_pad), lambda i: (0, 0)),
        ],
        out_specs=pl.BlockSpec((tb, C_pad), lambda i: (i, 0)),
        compiler_params=pltpu.CompilerParams(
            dimension_semantics=("parallel",)),
    )(z, mu, nhw, a, wpd, swct)
    return out[:B, :C]


def _reference_forward(z, means, log_stds, weights_per_dim, class_weights,
                       *, sum_dims=True, reduce_per_dim='logsumexp',
                       reduce_overall_mix='logsumexp'):
    """Plain-JAX reference of ClassWeightedHierarchicalGaussianMixture.forward."""
    lp = (-log_stds[None] - _HALF_LOG_2PI
          - 0.5 * ((z[:, None, :] - means[None]) / jnp.exp(log_stds[None])) ** 2)
    lw = jax.nn.log_softmax(weights_per_dim, axis=1)          # (O, M, D)
    wpm = lp[:, None] + lw[None]                              # (B, O, M, D)
    if reduce_per_dim == 'logsumexp':
        rpm = logsumexp(wpm, axis=2)
    elif reduce_per_dim == 'max':
        rpm = jnp.max(wpm, axis=2)
    else:
        rpm = wpm                                             # 'none'
    if sum_dims:
        rpm = jnp.sum(rpm, axis=-1)
    lcw = jax.nn.log_softmax(class_weights, axis=1)           # (C, O)
    if not sum_dims:
        lcw = lcw[..., None] / lp.shape[-1]
    if reduce_per_dim == 'none':
        lcw = lcw[..., None]
    wpc = rpm[:, None] + lcw[None]
    if reduce_overall_mix == 'logsumexp':
        return logsumexp(wpc, axis=2)
    elif reduce_overall_mix == 'max':
        return jnp.max(wpc, axis=2)
    return wpc


class NClassIndependentDist:
    """Minimal JAX port (parameter container) of the PyTorch dependent class."""

    def __init__(self, n_classes=None, n_dims=None, optimize_mean=True,
                 optimize_std=True, truncate_to=None, means=None, log_stds=None):
        del optimize_mean, optimize_std  # only affects trainability, not forward
        if means is not None:
            assert log_stds is not None
            self.class_means = means
            self.class_log_stds = log_stds
        else:
            self.class_means = jnp.zeros((n_classes, n_dims), jnp.float32)
            self.class_log_stds = jnp.zeros((n_classes, n_dims), jnp.float32)
        self.truncate_to = truncate_to


class ClassWeightedHierarchicalGaussianMixture:
    """JAX port of the PyTorch module; forward uses the Pallas kernel."""

    def __init__(self, n_classes, n_overall_mixes, n_dim_mixes, n_dims,
                 reduce_per_dim, reduce_overall_mix,
                 init_weight_std, init_mean_std, init_std_std,
                 key=None, **mix_dist_kwargs):
        if key is None:
            key = jax.random.PRNGKey(0)
        k_mean, k_std, k_w, k_cw = jax.random.split(key, 4)
        self.n_classes = n_classes
        self.n_dim_mixes = n_dim_mixes
        self.n_dims = n_dims
        self.mix_dist = NClassIndependentDist(
            n_classes=n_dim_mixes, n_dims=n_dims, **mix_dist_kwargs)
        self.mix_dist.class_means = init_mean_std * jax.random.normal(
            k_mean, (n_dim_mixes, n_dims), jnp.float32)
        self.mix_dist.class_log_stds = init_std_std * jax.random.normal(
            k_std, (n_dim_mixes, n_dims), jnp.float32)
        self.weights_per_dim = init_weight_std * jax.random.normal(
            k_w, (n_overall_mixes, n_dim_mixes, n_dims), jnp.float32)
        # PyTorch initializes class_weights to zeros; use small deterministic
        # random values so the class-weight path is exercised non-trivially.
        self.class_weights = 0.1 * jax.random.normal(
            k_cw, (n_classes, n_overall_mixes), jnp.float32)
        self.reduce_per_dim = reduce_per_dim
        self.reduce_overall_mix = reduce_overall_mix

    def forward(self, z, fixed=None):
        fixed = fixed or {}
        sum_dims = fixed.get('sum_dims', True)
        reduce_per_dim = fixed.get('reduce_per_dim', self.reduce_per_dim)
        reduce_overall_mix = fixed.get('reduce_overall_mix', self.reduce_overall_mix)
        if sum_dims and reduce_per_dim == 'logsumexp' and reduce_overall_mix == 'logsumexp':
            # TODO(synk): for tiny batches plain-XLA fusion would beat the
            # pallas_call launch overhead; kept on the kernel path for the demo.
            out = hierarchical_mixture_log_probs(
                z, self.mix_dist.class_means, self.mix_dist.class_log_stds,
                self.weights_per_dim, self.class_weights)
            return z, out
        # TODO(synk): 'max'/'none' reductions and sum_dims=False use the
        # plain-JAX path; 'gumbel_softmax' (stochastic) is not implemented.
        assert reduce_per_dim != 'gumbel_softmax' and reduce_overall_mix != 'gumbel_softmax'
        return z, _reference_forward(
            z, self.mix_dist.class_means, self.mix_dist.class_log_stds,
            self.weights_per_dim, self.class_weights,
            sum_dims=sum_dims, reduce_per_dim=reduce_per_dim,
            reduce_overall_mix=reduce_overall_mix)


if __name__ == "__main__":
    n_classes, n_overall_mixes, n_dim_mixes, n_dims, batch = 4, 3, 5, 32, 16

    key = jax.random.PRNGKey(0)
    k_mod, k_z = jax.random.split(key)
    model = ClassWeightedHierarchicalGaussianMixture(
        n_classes=n_classes, n_overall_mixes=n_overall_mixes,
        n_dim_mixes=n_dim_mixes, n_dims=n_dims,
        reduce_per_dim='logsumexp', reduce_overall_mix='logsumexp',
        init_weight_std=0.5, init_mean_std=0.3, init_std_std=0.1, key=k_mod)

    z = jax.random.normal(k_z, (batch, n_dims), jnp.float32)

    z_out, logdet = model.forward(z)
    logdet = jax.block_until_ready(logdet)
    assert z_out.shape == (batch, n_dims)
    assert logdet.shape == (batch, n_classes)

    # Sanity check against a plain-JAX reference of the same math.
    ref = _reference_forward(z, model.mix_dist.class_means,
                             model.mix_dist.class_log_stds,
                             model.weights_per_dim, model.class_weights)
    assert jnp.allclose(logdet, ref, atol=1e-4, rtol=1e-4), (logdet, ref)

    # Exercise the multi-tile (grid > 1) batch-tiled path as well.
    logdet_tiled = hierarchical_mixture_log_probs(
        z, model.mix_dist.class_means, model.mix_dist.class_log_stds,
        model.weights_per_dim, model.class_weights, block_batch=8)
    logdet_tiled = jax.block_until_ready(logdet_tiled)
    assert jnp.allclose(logdet_tiled, ref, atol=1e-4, rtol=1e-4)

    print("KERNEL_OK")
</pallas_src>

<mosaic_0001>
module attributes {stable_mosaic.version = 11 : i64} {
  func.func @_hier_mixture_kernel(%arg0: i32, %arg1: memref<16x32xf32, #tpu.memory_space<vmem>>, %arg2: memref<5x32xf32, #tpu.memory_space<vmem>>, %arg3: memref<5x32xf32, #tpu.memory_space<vmem>>, %arg4: memref<5x32xf32, #tpu.memory_space<vmem>>, %arg5: memref<15x32xf32, #tpu.memory_space<vmem>>, %arg6: memref<3x128xf32, #tpu.memory_space<vmem>>, %arg7: memref<16x128xf32, #tpu.memory_space<vmem>>) attributes {dimension_semantics = [#tpu.dimension_semantics<parallel>], iteration_bounds = array<i64: 1>, scalar_prefetch = 0 : i64, scratch_operands = 0 : i64, tpu.core_type = #tpu.core_type<tc>, window_params = [{transform_indices = @transform_0, window_bounds = array<i64: 16, 32>}, {pipeline_mode = #tpu.pipeline_mode<synchronous>, transform_indices = @transform_1, window_bounds = array<i64: 5, 32>}, {pipeline_mode = #tpu.pipeline_mode<synchronous>, transform_indices = @transform_2, window_bounds = array<i64: 5, 32>}, {pipeline_mode = #tpu.pipeline_mode<synchronous>, transform_indices = @transform_3, window_bounds = array<i64: 5, 32>}, {pipeline_mode = #tpu.pipeline_mode<synchronous>, transform_indices = @transform_4, window_bounds = array<i64: 15, 32>}, {pipeline_mode = #tpu.pipeline_mode<synchronous>, transform_indices = @transform_5, window_bounds = array<i64: 3, 128>}, {transform_indices = @transform_6, window_bounds = array<i64: 16, 128>}]} {
    %c0 = arith.constant 0 : index
    %c0_0 = arith.constant 0 : index
    %0 = vector.load %arg1[%c0, %c0_0] : memref<16x32xf32, #tpu.memory_space<vmem>>, vector<16x32xf32>
    %c0_1 = arith.constant 0 : index
    %c0_2 = arith.constant 0 : index
    %1 = vector.load %arg2[%c0_1, %c0_2] : memref<5x32xf32, #tpu.memory_space<vmem>>, vector<1x32xf32>
    %2 = vector.broadcast %1 : vector<1x32xf32> to vector<16x32xf32>
    %3 = arith.subf %0, %2 : vector<16x32xf32>
    %c0_3 = arith.constant 0 : index
    %c0_4 = arith.constant 0 : index
    %4 = vector.load %arg4[%c0_3, %c0_4] : memref<5x32xf32, #tpu.memory_space<vmem>>, vector<1x32xf32>
    %c0_5 = arith.constant 0 : index
    %c0_6 = arith.constant 0 : index
    %5 = vector.load %arg3[%c0_5, %c0_6] : memref<5x32xf32, #tpu.memory_space<vmem>>, vector<1x32xf32>
    %6 = vector.broadcast %5 : vector<1x32xf32> to vector<16x32xf32>
    %7 = arith.mulf %6, %3 : vector<16x32xf32>
    %8 = arith.mulf %7, %3 : vector<16x32xf32>
    %9 = vector.broadcast %4 : vector<1x32xf32> to vector<16x32xf32>
    %10 = arith.addf %9, %8 : vector<16x32xf32>
    %c1 = arith.constant 1 : index
    %c0_7 = arith.constant 0 : index
    %11 = vector.load %arg2[%c1, %c0_7] : memref<5x32xf32, #tpu.memory_space<vmem>>, vector<1x32xf32>
    %12 = vector.broadcast %11 : vector<1x32xf32> to vector<16x32xf32>
    %13 = arith.subf %0, %12 : vector<16x32xf32>
    %c1_8 = arith.constant 1 : index
    %c0_9 = arith.constant 0 : index
    %14 = vector.load %arg4[%c1_8, %c0_9] : memref<5x32xf32, #tpu.memory_space<vmem>>, vector<1x32xf32>
    %c1_10 = arith.constant 1 : index
    %c0_11 = arith.constant 0 : index
    %15 = vector.load %arg3[%c1_10, %c0_11] : memref<5x32xf32, #tpu.memory_space<vmem>>, vector<1x32xf32>
    %16 = vector.broadcast %15 : vector<1x32xf32> to vector<16x32xf32>
    %17 = arith.mulf %16, %13 : vector<16x32xf32>
    %18 = arith.mulf %17, %13 : vector<16x32xf32>
    %19 = vector.broadcast %14 : vector<1x32xf32> to vector<16x32xf32>
    %20 = arith.addf %19, %18 : vector<16x32xf32>
    %c2 = arith.constant 2 : index
    %c0_12 = arith.constant 0 : index
    %21 = vector.load %arg2[%c2, %c0_12] : memref<5x32xf32, #tpu.memory_space<vmem>>, vector<1x32xf32>
    %22 = vector.broadcast %21 : vector<1x32xf32> to vector<16x32xf32>
    %23 = arith.subf %0, %22 : vector<16x32xf32>
    %c2_13 = arith.constant 2 : index
    %c0_14 = arith.constant 0 : index
    %24 = vector.load %arg4[%c2_13, %c0_14] : memref<5x32xf32, #tpu.memory_space<vmem>>, vector<1x32xf32>
    %c2_15 = arith.constant 2 : index
    %c0_16 = arith.constant 0 : index
    %25 = vector.load %arg3[%c2_15, %c0_16] : memref<5x32xf32, #tpu.memory_space<vmem>>, vector<1x32xf32>
    %26 = vector.broadcast %25 : vector<1x32xf32> to vector<16x32xf32>
    %27 = arith.mulf %26, %23 : vector<16x32xf32>
    %28 = arith.mulf %27, %23 : vector<16x32xf32>
    %29 = vector.broadcast %24 : vector<1x32xf32> to vector<16x32xf32>
    %30 = arith.addf %29, %28 : vector<16x32xf32>
    %c3 = arith.constant 3 : index
    %c0_17 = arith.constant 0 : index
    %31 = vector.load %arg2[%c3, %c0_17] : memref<5x32xf32, #tpu.memory_space<vmem>>, vector<1x32xf32>
    %32 = vector.broadcast %31 : vector<1x32xf32> to vector<16x32xf32>
    %33 = arith.subf %0, %32 : vector<16x32xf32>
    %c3_18 = arith.constant 3 : index
    %c0_19 = arith.constant 0 : index
    %34 = vector.load %arg4[%c3_18, %c0_19] : memref<5x32xf32, #tpu.memory_space<vmem>>, vector<1x32xf32>
    %c3_20 = arith.constant 3 : index
    %c0_21 = arith.constant 0 : index
    %35 = vector.load %arg3[%c3_20, %c0_21] : memref<5x32xf32, #tpu.memory_space<vmem>>, vector<1x32xf32>
    %36 = vector.broadcast %35 : vector<1x32xf32> to vector<16x32xf32>
    %37 = arith.mulf %36, %33 : vector<16x32xf32>
    %38 = arith.mulf %37, %33 : vector<16x32xf32>
    %39 = vector.broadcast %34 : vector<1x32xf32> to vector<16x32xf32>
    %40 = arith.addf %39, %38 : vector<16x32xf32>
    %c4 = arith.constant 4 : index
    %c0_22 = arith.constant 0 : index
    %41 = vector.load %arg2[%c4, %c0_22] : memref<5x32xf32, #tpu.memory_space<vmem>>, vector<1x32xf32>
    %42 = vector.broadcast %41 : vector<1x32xf32> to vector<16x32xf32>
    %43 = arith.subf %0, %42 : vector<16x32xf32>
    %c4_23 = arith.constant 4 : index
    %c0_24 = arith.constant 0 : index
    %44 = vector.load %arg4[%c4_23, %c0_24] : memref<5x32xf32, #tpu.memory_space<vmem>>, vector<1x32xf32>
    %c4_25 = arith.constant 4 : index
    %c0_26 = arith.constant 0 : index
    %45 = vector.load %arg3[%c4_25, %c0_26] : memref<5x32xf32, #tpu.memory_space<vmem>>, vector<1x32xf32>
    %46 = vector.broadcast %45 : vector<1x32xf32> to vector<16x32xf32>
    %47 = arith.mulf %46, %43 : vector<16x32xf32>
    %48 = arith.mulf %47, %43 : vector<16x32xf32>
    %49 = vector.broadcast %44 : vector<1x32xf32> to vector<16x32xf32>
    %50 = arith.addf %49, %48 : vector<16x32xf32>
    %51 = arith.maximumf %10, %20 : vector<16x32xf32>
    %52 = arith.maximumf %51, %30 : vector<16x32xf32>
    %53 = arith.maximumf %52, %40 : vector<16x32xf32>
    %54 = arith.maximumf %53, %50 : vector<16x32xf32>
    %55 = arith.subf %10, %54 : vector<16x32xf32>
    %56 = math.exp %55 : vector<16x32xf32>
    %57 = arith.subf %20, %54 : vector<16x32xf32>
    %58 = math.exp %57 : vector<16x32xf32>
    %59 = arith.subf %30, %54 : vector<16x32xf32>
    %60 = math.exp %59 : vector<16x32xf32>
    %61 = arith.subf %40, %54 : vector<16x32xf32>
    %62 = math.exp %61 : vector<16x32xf32>
    %63 = arith.subf %50, %54 : vector<16x32xf32>
    %64 = math.exp %63 : vector<16x32xf32>
    %c0_27 = arith.constant 0 : index
    %c0_28 = arith.constant 0 : index
    %65 = vector.load %arg5[%c0_27, %c0_28] : memref<15x32xf32, #tpu.memory_space<vmem>>, vector<1x32xf32>
    %66 = vector.broadcast %65 : vector<1x32xf32> to vector<16x32xf32>
    %67 = arith.mulf %56, %66 : vector<16x32xf32>
    %c1_29 = arith.constant 1 : index
    %c0_30 = arith.constant 0 : index
    %68 = vector.load %arg5[%c1_29, %c0_30] : memref<15x32xf32, #tpu.memory_space<vmem>>, vector<1x32xf32>
    %69 = vector.broadcast %68 : vector<1x32xf32> to vector<16x32xf32>
    %70 = arith.mulf %58, %69 : vector<16x32xf32>
    %71 = arith.addf %67, %70 : vector<16x32xf32>
    %c2_31 = arith.constant 2 : index
    %c0_32 = arith.constant 0 : index
    %72 = vector.load %arg5[%c2_31, %c0_32] : memref<15x32xf32, #tpu.memory_space<vmem>>, vector<1x32xf32>
    %73 = vector.broadcast %72 : vector<1x32xf32> to vector<16x32xf32>
    %74 = arith.mulf %60, %73 : vector<16x32xf32>
    %75 = arith.addf %71, %74 : vector<16x32xf32>
    %c3_33 = arith.constant 3 : index
    %c0_34 = arith.constant 0 : index
    %76 = vector.load %arg5[%c3_33, %c0_34] : memref<15x32xf32, #tpu.memory_space<vmem>>, vector<1x32xf32>
    %77 = vector.broadcast %76 : vector<1x32xf32> to vector<16x32xf32>
    %78 = arith.mulf %62, %77 : vector<16x32xf32>
    %79 = arith.addf %75, %78 : vector<16x32xf32>
    %c4_35 = arith.constant 4 : index
    %c0_36 = arith.constant 0 : index
    %80 = vector.load %arg5[%c4_35, %c0_36] : memref<15x32xf32, #tpu.memory_space<vmem>>, vector<1x32xf32>
    %81 = vector.broadcast %80 : vector<1x32xf32> to vector<16x32xf32>
    %82 = arith.mulf %64, %81 : vector<16x32xf32>
    %83 = arith.addf %79, %82 : vector<16x32xf32>
    %84 = math.log %83 : vector<16x32xf32>
    %85 = arith.addf %54, %84 : vector<16x32xf32>
    %cst = arith.constant dense<0.000000e+00> : vector<16xf32>
    %86 = vector.multi_reduction <add>, %85, %cst [1] : vector<16x32xf32> to vector<16xf32>
    %87 = vector.shape_cast %86 : vector<16xf32> to vector<16x1xf32>
    %c5 = arith.constant 5 : index
    %c0_37 = arith.constant 0 : index
    %88 = vector.load %arg5[%c5, %c0_37] : memref<15x32xf32, #tpu.memory_space<vmem>>, vector<1x32xf32>
    %89 = vector.broadcast %88 : vector<1x32xf32> to vector<16x32xf32>
    %90 = arith.mulf %56, %89 : vector<16x32xf32>
    %c6 = arith.constant 6 : index
    %c0_38 = arith.constant 0 : index
    %91 = vector.load %arg5[%c6, %c0_38] : memref<15x32xf32, #tpu.memory_space<vmem>>, vector<1x32xf32>
    %92 = vector.broadcast %91 : vector<1x32xf32> to vector<16x32xf32>
    %93 = arith.mulf %58, %92 : vector<16x32xf32>
    %94 = arith.addf %90, %93 : vector<16x32xf32>
    %c7 = arith.constant 7 : index
    %c0_39 = arith.constant 0 : index
    %95 = vector.load %arg5[%c7, %c0_39] : memref<15x32xf32, #tpu.memory_space<vmem>>, vector<1x32xf32>
    %96 = vector.broadcast %95 : vector<1x32xf32> to vector<16x32xf32>
    %97 = arith.mulf %60, %96 : vector<16x32xf32>
    %98 = arith.addf %94, %97 : vector<16x32xf32>
    %c8 = arith.constant 8 : index
    %c0_40 = arith.constant 0 : index
    %99 = vector.load %arg5[%c8, %c0_40] : memref<15x32xf32, #tpu.memory_space<vmem>>, vector<1x32xf32>
    %100 = vector.broadcast %99 : vector<1x32xf32> to vector<16x32xf32>
    %101 = arith.mulf %62, %100 : vector<16x32xf32>
    %102 = arith.addf %98, %101 : vector<16x32xf32>
    %c9 = arith.constant 9 : index
    %c0_41 = arith.constant 0 : index
    %103 = vector.load %arg5[%c9, %c0_41] : memref<15x32xf32, #tpu.memory_space<vmem>>, vector<1x32xf32>
    %104 = vector.broadcast %103 : vector<1x32xf32> to vector<16x32xf32>
    %105 = arith.mulf %64, %104 : vector<16x32xf32>
    %106 = arith.addf %102, %105 : vector<16x32xf32>
    %107 = math.log %106 : vector<16x32xf32>
    %108 = arith.addf %54, %107 : vector<16x32xf32>
    %cst_42 = arith.constant dense<0.000000e+00> : vector<16xf32>
    %109 = vector.multi_reduction <add>, %108, %cst_42 [1] : vector<16x32xf32> to vector<16xf32>
    %110 = vector.shape_cast %109 : vector<16xf32> to vector<16x1xf32>
    %c10 = arith.constant 10 : index
    %c0_43 = arith.constant 0 : index
    %111 = vector.load %arg5[%c10, %c0_43] : memref<15x32xf32, #tpu.memory_space<vmem>>, vector<1x32xf32>
    %112 = vector.broadcast %111 : vector<1x32xf32> to vector<16x32xf32>
    %113 = arith.mulf %56, %112 : vector<16x32xf32>
    %c11 = arith.constant 11 : index
    %c0_44 = arith.constant 0 : index
    %114 = vector.load %arg5[%c11, %c0_44] : memref<15x32xf32, #tpu.memory_space<vmem>>, vector<1x32xf32>
    %115 = vector.broadcast %114 : vector<1x32xf32> to vector<16x32xf32>
    %116 = arith.mulf %58, %115 : vector<16x32xf32>
    %117 = arith.addf %113, %116 : vector<16x32xf32>
    %c12 = arith.constant 12 : index
    %c0_45 = arith.constant 0 : index
    %118 = vector.load %arg5[%c12, %c0_45] : memref<15x32xf32, #tpu.memory_space<vmem>>, vector<1x32xf32>
    %119 = vector.broadcast %118 : vector<1x32xf32> to vector<16x32xf32>
    %120 = arith.mulf %60, %119 : vector<16x32xf32>
    %121 = arith.addf %117, %120 : vector<16x32xf32>
    %c13 = arith.constant 13 : index
    %c0_46 = arith.constant 0 : index
    %122 = vector.load %arg5[%c13, %c0_46] : memref<15x32xf32, #tpu.memory_space<vmem>>, vector<1x32xf32>
    %123 = vector.broadcast %122 : vector<1x32xf32> to vector<16x32xf32>
    %124 = arith.mulf %62, %123 : vector<16x32xf32>
    %125 = arith.addf %121, %124 : vector<16x32xf32>
    %c14 = arith.constant 14 : index
    %c0_47 = arith.constant 0 : index
    %126 = vector.load %arg5[%c14, %c0_47] : memref<15x32xf32, #tpu.memory_space<vmem>>, vector<1x32xf32>
    %127 = vector.broadcast %126 : vector<1x32xf32> to vector<16x32xf32>
    %128 = arith.mulf %64, %127 : vector<16x32xf32>
    %129 = arith.addf %125, %128 : vector<16x32xf32>
    %130 = math.log %129 : vector<16x32xf32>
    %131 = arith.addf %54, %130 : vector<16x32xf32>
    %cst_48 = arith.constant dense<0.000000e+00> : vector<16xf32>
    %132 = vector.multi_reduction <add>, %131, %cst_48 [1] : vector<16x32xf32> to vector<16xf32>
    %133 = vector.shape_cast %132 : vector<16xf32> to vector<16x1xf32>
    %134 = arith.maximumf %87, %110 : vector<16x1xf32>
    %135 = arith.maximumf %134, %133 : vector<16x1xf32>
    %136 = arith.subf %87, %135 : vector<16x1xf32>
    %137 = math.exp %136 : vector<16x1xf32>
    %c0_49 = arith.constant 0 : index
    %c0_50 = arith.constant 0 : index
    %138 = vector.load %arg6[%c0_49, %c0_50] : memref<3x128xf32, #tpu.memory_space<vmem>>, vector<1x128xf32>
    %139 = vector.broadcast %137 : vector<16x1xf32> to vector<16x128xf32>
    %140 = vector.broadcast %138 : vector<1x128xf32> to vector<16x128xf32>
    %141 = arith.mulf %139, %140 : vector<16x128xf32>
    %142 = arith.subf %110, %135 : vector<16x1xf32>
    %143 = math.exp %142 : vector<16x1xf32>
    %c1_51 = arith.constant 1 : index
    %c0_52 = arith.constant 0 : index
    %144 = vector.load %arg6[%c1_51, %c0_52] : memref<3x128xf32, #tpu.memory_space<vmem>>, vector<1x128xf32>
    %145 = vector.broadcast %143 : vector<16x1xf32> to vector<16x128xf32>
    %146 = vector.broadcast %144 : vector<1x128xf32> to vector<16x128xf32>
    %147 = arith.mulf %145, %146 : vector<16x128xf32>
    %148 = arith.addf %141, %147 : vector<16x128xf32>
    %149 = arith.subf %133, %135 : vector<16x1xf32>
    %150 = math.exp %149 : vector<16x1xf32>
    %c2_53 = arith.constant 2 : index
    %c0_54 = arith.constant 0 : index
    %151 = vector.load %arg6[%c2_53, %c0_54] : memref<3x128xf32, #tpu.memory_space<vmem>>, vector<1x128xf32>
    %152 = vector.broadcast %150 : vector<16x1xf32> to vector<16x128xf32>
    %153 = vector.broadcast %151 : vector<1x128xf32> to vector<16x128xf32>
    %154 = arith.mulf %152, %153 : vector<16x128xf32>
    %155 = arith.addf %148, %154 : vector<16x128xf32>
    %156 = math.log %155 : vector<16x128xf32>
    %157 = vector.broadcast %135 : vector<16x1xf32> to vector<16x128xf32>
    %158 = arith.addf %157, %156 : vector<16x128xf32>
    %c0_55 = arith.constant 0 : index
    %c0_56 = arith.constant 0 : index
    %159 = vector.load %arg7[%c0_55, %c0_56] : memref<16x128xf32, #tpu.memory_space<vmem>>, vector<16x128xf32>
    tpu.vector_store %arg7[%c0_55, %c0_56], %158 {strides = array<i32>} : memref<16x128xf32, #tpu.memory_space<vmem>>, vector<16x128xf32>,
    return
  }
  func.func @transform_0(%arg0: i32) -> (i32, i32) {
    %c0_i32 = arith.constant 0 : i32
    %c0_i32_0 = arith.constant 0 : i32
    return %arg0, %c0_i32 : i32, i32
  }
  func.func @transform_1(%arg0: i32) -> (i32, i32) {
    %c0_i32 = arith.constant 0 : i32
    %c0_i32_0 = arith.constant 0 : i32
    %c0_i32_1 = arith.constant 0 : i32
    return %c0_i32, %c0_i32_0 : i32, i32
  }
  func.func @transform_2(%arg0: i32) -> (i32, i32) {
    %c0_i32 = arith.constant 0 : i32
    %c0_i32_0 = arith.constant 0 : i32
    %c0_i32_1 = arith.constant 0 : i32
    return %c0_i32, %c0_i32_0 : i32, i32
  }
  func.func @transform_3(%arg0: i32) -> (i32, i32) {
    %c0_i32 = arith.constant 0 : i32
    %c0_i32_0 = arith.constant 0 : i32
    %c0_i32_1 = arith.constant 0 : i32
    return %c0_i32, %c0_i32_0 : i32, i32
  }
  func.func @transform_4(%arg0: i32) -> (i32, i32) {
    %c0_i32 = arith.constant 0 : i32
    %c0_i32_0 = arith.constant 0 : i32
    %c0_i32_1 = arith.constant 0 : i32
    return %c0_i32, %c0_i32_0 : i32, i32
  }
  func.func @transform_5(%arg0: i32) -> (i32, i32) {
    %c0_i32 = arith.constant 0 : i32
    %c0_i32_0 = arith.constant 0 : i32
    %c0_i32_1 = arith.constant 0 : i32
    return %c0_i32, %c0_i32_0 : i32, i32
  }
  func.func @transform_6(%arg0: i32) -> (i32, i32) {
    %c0_i32 = arith.constant 0 : i32
    %c0_i32_0 = arith.constant 0 : i32
    return %arg0, %c0_i32 : i32, i32
  }
}

</mosaic_0001>

<bundles_post_ra>
// kernel: tpu_custom_call.1
= control target key start
LH: loop header
LB: loop body
LE: loop exit
PB: predicated region body
PF: predicated region fallthrough
CT: control target
= control target key end

     0   :  { %11 = vsyncpa [#allocation3], 0  ;;  %s803_s0 = inlined_call_operand.hbm [shape: f32[16,32], index: 0, kind: input, shape index: {}]   ;;  %s804_s1 = inlined_call_operand.hbm [shape: f32[5,32], index: 1, kind: input, shape index: {}]   ;;  %s805_s2 = inlined_call_operand.hbm [shape: f32[5,32], index: 2, kind: input, shape index: {}]   ;;  %s806_s3 = inlined_call_operand.hbm [shape: f32[5,32], index: 3, kind: input, shape index: {}]   ;;  %s807_s4 = inlined_call_operand.hbm [shape: f32[15,32], index: 4, kind: input, shape index: {}]   ;;  %s808_s5 = inlined_call_operand.vmem [shape: f32[3,128], index: 5, kind: input, shape index: {}]   ;;  %s809_s6 = inlined_call_operand.hbm [shape: f32[16,128], index: 6, kind: output, shape index: {}]  }
   0x1   :  { %12 = vsyncpa [#allocation6], 0 }
   0x2   :  { %13 = vsyncpa [#allocation9], 0 }
   0x3   :  { %14 = vsyncpa [#allocation4], 0  ;;  %s698_s21 = smov [#allocation5]   ;;  %s699_s23 = smov [#allocation8]  }
   0x4   :  { %s33_s22 = sshll.u32 %s698_s21, 4  ;;  %s53_s24 = sshll.u32 %s699_s23, 4  ;;  %s34_s22 = int_to_ptr.vmem [resolvable:$true] %s33_s22  ;;  %s54_s24 = int_to_ptr.vmem [resolvable:$true] %s53_s24 }
   0x5   :  { %s578_s25 = scalar_lea.vmem %s34_s22, 128  ;;  %p583_p1 = scmp.lt.s32.totalorder %s34_s22, %s34_s22 }
   0x6   :  { %p579_p0 = scmp.ne.s32.totalorder %s34_s22, %s578_s25  ;;  %p584_p2 = scmp.lt.s32.totalorder %s578_s25, %s578_s25 }
   0x8   :  { %p585_p3 = por %p584_p2, %p583_p1 }
   0xa   :  { %p586_p4 = pnand %p585_p3, %p579_p0 }
   0xc   :  { %589 = shalt.err (!%p586_p4)
}
   0xd   :  { %36 = dma.hbm_to_vmem [thread:$0]  %s804_s1, 128, %s34_s22, [#allocation6]  }
   0xe   :  { %s598_s28 = scalar_lea.vmem %s54_s24, 128  ;;  %p603_p6 = scmp.lt.s32.totalorder %s54_s24, %s54_s24 }
   0xf   :  { %p599_p5 = scmp.ne.s32.totalorder %s54_s24, %s598_s28  ;;  %p604_p7 = scmp.lt.s32.totalorder %s598_s28, %s598_s28 }
  0x11   :  { %p605_p8 = por %p604_p7, %p603_p6 }
  0x13   :  { %p606_p9 = pnand %p605_p8, %p599_p5 }
  0x15   :  { %609 = shalt.err (!%p606_p9)
}
  0x16   :  { %56 = dma.hbm_to_vmem [thread:$0]  %s806_s3, 128, %s54_s24, [#allocation9]  }
  0x17   :  { %s700_s7 = smov [#allocation2]  }
  0x18   :  { %s20_s8 = sshll.u32 %s700_s7, 4  ;;  %s21_s8 = int_to_ptr.vmem [resolvable:$true] %s20_s8 }
  0x19   :  { %s618_s9 = scalar_lea.vmem %s21_s8, 256  ;;  %p623_p11 = scmp.lt.s32.totalorder %s21_s8, %s21_s8 }
  0x1a   :  { %p619_p10 = scmp.ne.s32.totalorder %s21_s8, %s618_s9  ;;  %p624_p12 = scmp.lt.s32.totalorder %s618_s9, %s618_s9 }
  0x1c   :  { %p625_p13 = por %p624_p12, %p623_p11 }
  0x1e   :  { %p626_p0 = pnand %p625_p13, %p619_p10 }
  0x20   :  { %629 = shalt.err (!%p626_p0)
}
  0x21   :  { %s701_s1 = smov 128   ;;  %s702_s10 = smov 8  }
  0x22   :  { %26 = dma.hbm_to_vmem [thread:$0]  %s803_s0, 256, %s21_s8, [#allocation3], %s701_s1, %s701_s1, %s702_s10  }
  0x23   :  { %s703_s3 = smov [#allocation7]   ;;  %s704_s14 = smov [#allocation10]  }
  0x24   :  { %s43_s13 = sshll.u32 %s703_s3, 4  ;;  %s62_s15 = sshll.u32 %s704_s14, 4  ;;  %s44_s13 = int_to_ptr.vmem [resolvable:$true] %s43_s13  ;;  %s63_s15 = int_to_ptr.vmem [resolvable:$true] %s62_s15 }
  0x25   :  { %s638_s16 = scalar_lea.vmem %s44_s13, 128  ;;  %p643_p2 = scmp.lt.s32.totalorder %s44_s13, %s44_s13 }
  0x26   :  { %p639_p1 = scmp.ne.s32.totalorder %s44_s13, %s638_s16  ;;  %p644_p3 = scmp.lt.s32.totalorder %s638_s16, %s638_s16 }
  0x28   :  { %p645_p4 = por %p644_p3, %p643_p2 }
  0x2a   :  { %p646_p5 = pnand %p645_p4, %p639_p1 }
  0x2c   :  { %649 = shalt.err (!%p646_p5)
}
  0x2d   :  { %46 = dma.hbm_to_vmem [thread:$0]  %s805_s2, 128, %s44_s13, [#allocation6]  }
  0x2e   :  { %s658_s19 = scalar_lea.vmem %s63_s15, 256  ;;  %p663_p7 = scmp.lt.s32.totalorder %s63_s15, %s63_s15 }
  0x2f   :  { %p659_p6 = scmp.ne.s32.totalorder %s63_s15, %s658_s19  ;;  %p664_p8 = scmp.lt.s32.totalorder %s658_s19, %s658_s19 }
  0x31   :  { %p665_p9 = por %p664_p8, %p663_p7 }
  0x33   :  { %p666_p10 = pnand %p665_p9, %p659_p6 }
  0x35   :  { %669 = shalt.err (!%p666_p10)
}
  0x36   :  { %68 = dma.hbm_to_vmem [thread:$0]  %s807_s4, 256, %s63_s15, [#allocation9], %s701_s1, %s701_s1, %s702_s10  }
  0x37   :  { %690 = dma.done.wait [#allocation3], 256  }
  0x38   :  { %691 = vsyncadd [#allocation3], 4294967040 }
  0x39   :  { %692 = dma.done.wait [#allocation6], 256  }
  0x3a   :  { %693 = vsyncadd [#allocation6], 4294967040 }
  0x3b   :  { %694 = dma.done.wait [#allocation9], 384  }
  0x3c   :  { %695 = vsyncadd [#allocation9], 4294966912  ;;  %v86_v0 = vld [vmem:[#allocation2] sm:$0xff]  ;;  %v481_v1 = vld [vmem:[#allocation5] ss:$0 sm:$0xff]  ;;  %vm290_vm0 = vcmask 261120  }
  0x3d   :  { %v93_v2 = vsub.f32 %v86_v0, %v481_v1  ;;  %v482_v3 = vld [vmem:[#allocation7] ss:$0 sm:$0xff]  ;;  %v484_v4 = vld [vmem:[#allocation5 + $0x1] ss:$0 sm:$0xff]  ;;  %v485_v6 = vld [vmem:[#allocation7 + $0x1] ss:$0 sm:$0xff] }
  0x3e   :  { %v116_v5 = vsub.f32 %v86_v0, %v484_v4  ;;  %v487_v7 = vld [vmem:[#allocation5 + $0x2] ss:$0 sm:$0xff]  ;;  %v488_v10 = vld [vmem:[#allocation7 + $0x2] ss:$0 sm:$0xff]  ;;  %v490_v11 = vld [vmem:[#allocation5 + $0x3] ss:$0 sm:$0xff] }
  0x3f   :  { %v101_v8 = vmul.f32 %v482_v3, %v93_v2  ;;  %v139_v9 = vsub.f32 %v86_v0, %v487_v7  ;;  %v483_v12 = vld [vmem:[#allocation8] ss:$0 sm:$0xff]  ;;  %v162_v14 = vsub.f32 %v86_v0, %v490_v11  ;;  %v491_v15 = vld [vmem:[#allocation7 + $0x3] ss:$0 sm:$0xff]  ;;  %v493_v16 = vld [vmem:[#allocation5 + $0x4] ss:$0 sm:$0xff] }
  0x40   :  { %v124_v13 = vmul.f32 %v485_v6, %v116_v5  ;;  %v486_v18 = vld [vmem:[#allocation8 + $0x1] ss:$0 sm:$0xff]  ;;  %v185_v20 = vsub.f32 %v86_v0, %v493_v16  ;;  %v494_v21 = vld [vmem:[#allocation7 + $0x4] ss:$0 sm:$0xff]  ;;  %v489_v23 = vld [vmem:[#allocation8 + $0x2] ss:$0 sm:$0xff] }
  0x41   :  { %v103_v17 = vmul.f32 %v101_v8, %v93_v2  ;;  %v147_v19 = vmul.f32 %v488_v10, %v139_v9  ;;  %v170_v24 = vmul.f32 %v491_v15, %v162_v14  ;;  %v492_v27 = vld [vmem:[#allocation8 + $0x3] ss:$0 sm:$0xff]  ;;  %v87_v31 = vld [vmem:[#allocation2 + $0x8] sm:$0xff]  ;;  %v495_v33 = vld [vmem:[#allocation8 + $0x4] ss:$0 sm:$0xff] }
  0x42   :  { %v126_v22 = vmul.f32 %v124_v13, %v116_v5  ;;  %v193_v28 = vmul.f32 %v494_v21, %v185_v20  ;;  %v94_v35 = vsub.f32 %v87_v31, %v481_v1  ;;  %v117_v36 = vsub.f32 %v87_v31, %v484_v4 }
  0x43   :  { %v109_v25 = vadd.f32 %v483_v12, %v103_v17  ;;  %v149_v26 = vmul.f32 %v147_v19, %v139_v9  ;;  %v172_v30 = vmul.f32 %v170_v24, %v162_v14  ;;  %v140_v39 = vsub.f32 %v87_v31, %v487_v7  ;;  %v502_v24 = vld [vmem:[#allocation10 + $0x6] ss:$0 sm:$0xff] }
  0x44   :  { %v132_v29 = vadd.f32 %v486_v18, %v126_v22  ;;  %v195_v34 = vmul.f32 %v193_v28, %v185_v20  ;;  %v163_v40 = vsub.f32 %v87_v31, %v490_v11  ;;  %v102_v41 = vmul.f32 %v482_v3, %v94_v35  ;;  %v496_v22 = vld [vmem:[#allocation10] ss:$0 sm:$0xff]  ;;  %v503_v28 = vld [vmem:[#allocation10 + $0x7] ss:$0 sm:$0xff] }
  0x45   :  { %v155_v32 = vadd.f32 %v489_v23, %v149_v26  ;;  %v178_v37 = vadd.f32 %v492_v27, %v172_v30  ;;  %v125_v42 = vmul.f32 %v485_v6, %v117_v36  ;;  %v186_v43 = vsub.f32 %v87_v31, %v493_v16  ;;  %v507_v26 = vld [vmem:[#allocation10 + $0xb] ss:$0 sm:$0xff]  ;;  %v508_v30 = vld [vmem:[#allocation10 + $0xc] ss:$0 sm:$0xff] }
  0x46   :  { %v203_v38 = vmax.f32 %v109_v25, %v132_v29  ;;  %v201_v44 = vadd.f32 %v495_v33, %v195_v34  ;;  %v148_v46 = vmul.f32 %v488_v10, %v140_v39  ;;  %v171_v47 = vmul.f32 %v491_v15, %v163_v40 }
  0x47   :  { %v104_v48 = vmul.f32 %v102_v41, %v94_v35  ;;  %v127_v49 = vmul.f32 %v125_v42, %v117_v36  ;;  %v194_v50 = vmul.f32 %v494_v21, %v186_v43  ;;  %v501_v21 = vld [vmem:[#allocation10 + $0x5] ss:$0 sm:$0xff]  ;;  %v499_v35 = vld [vmem:[#allocation10 + $0x3] ss:$0 sm:$0xff] }
  0x48   :  { %v205_v45 = vmax.f32 %v203_v38, %v155_v32  ;;  %v150_v52 = vmul.f32 %v148_v46, %v140_v39  ;;  %v173_v53 = vmul.f32 %v171_v47, %v163_v40 }
  0x49   :  { %v110_v54 = vadd.f32 %v483_v12, %v104_v48  ;;  %v133_v55 = vadd.f32 %v486_v18, %v127_v49  ;;  %v196_v56 = vmul.f32 %v194_v50, %v186_v43  ;;  %v505_v43 = vld [vmem:[#allocation10 + $0x9] ss:$0 sm:$0xff] }
  0x4a   :  { %v207_v51 = vmax.f32 %v205_v45, %v178_v37  ;;  %v156_v58 = vadd.f32 %v489_v23, %v150_v52  ;;  %v179_v59 = vadd.f32 %v492_v27, %v173_v53  ;;  %v506_v23 = vld [vmem:[#allocation10 + $0xa] ss:$0 sm:$0xff]  ;;  %v500_v45 = vld [vmem:[#allocation10 + $0x4] ss:$0 sm:$0xff]  ;;  %v509_v52 = vld [vmem:[#allocation10 + $0xd] ss:$0 sm:$0xff] }
  0x4b   :  { %v204_v60 = vmax.f32 %v110_v54, %v133_v55  ;;  %v202_v2 = vadd.f32 %v495_v33, %v196_v56  ;;  %v504_v33 = vld [vmem:[#allocation10 + $0x8] ss:$0 sm:$0xff]  ;;  %v510_v53 = vld [vmem:[#allocation10 + $0xe] ss:$0 sm:$0xff] }
  0x4c   :  { %v762_v57 = vmax.f32 %v207_v51, %v201_v44 }
  0x4d   :  { %v206_v3 = vmax.f32 %v204_v60, %v156_v58 }
  0x4e   :  { %v211_v61 = vsub.f32 %v109_v25, %v762_v57  ;;  %v217_v62 = vsub.f32 %v132_v29, %v762_v57  ;;  %v223_v63 = vsub.f32 %v155_v32, %v762_v57  ;;  %v229_v0 = vsub.f32 %v178_v37, %v762_v57  ;;  %v497_v25 = vld [vmem:[#allocation10 + $0x1] ss:$0 sm:$0xff]  ;;  %v498_v29 = vld [vmem:[#allocation10 + $0x2] ss:$0 sm:$0xff] }
  0x4f   :  { %v235_v1 = vsub.f32 %v201_v44, %v762_v57  ;;  %v208_v8 = vmax.f32 %v206_v3, %v179_v59 }
  0x50   :  { %v213_v4 = vmul.f32 1.442695, %v211_v61  ;;  %v219_v5 = vmul.f32 1.442695, %v217_v62  ;;  %v225_v6 = vmul.f32 1.442695, %v223_v63 }
  0x51   :  { %v231_v7 = vmul.f32 1.442695, %v229_v0  ;;  %v237_v9 = vmul.f32 1.442695, %v235_v1  ;;  %v769_v10 = vmax.f32 %v208_v8, %v202_v2 }
  0x52   :  { %522 = vpow2.f32 %v213_v4 }
  0x53   :  { %524 = vpow2.f32 %v219_v5  ;;  %v212_v11 = vsub.f32 %v110_v54, %v769_v10  ;;  %v218_v12 = vsub.f32 %v133_v55, %v769_v10  ;;  %v224_v13 = vsub.f32 %v156_v58, %v769_v10 }
  0x54   :  { %526 = vpow2.f32 %v225_v6  ;;  %v230_v14 = vsub.f32 %v179_v59, %v769_v10  ;;  %v236_v15 = vsub.f32 %v202_v2, %v769_v10 }
  0x55   :  { %528 = vpow2.f32 %v231_v7  ;;  %v215_v16 = vmul.f32 1.442695, %v212_v11  ;;  %v221_v17 = vmul.f32 1.442695, %v218_v12  ;;  %v227_v18 = vmul.f32 1.442695, %v224_v13 }
  0x56   :  { %530 = vpow2.f32 %v237_v9  ;;  %v233_v19 = vmul.f32 1.442695, %v230_v14  ;;  %v239_v20 = vmul.f32 1.442695, %v236_v15 }
  0x57   :  { %532 = vpow2.f32 %v215_v16 }
  0x58   :  { %534 = vpow2.f32 %v221_v17 }
  0x59   :  { %536 = vpow2.f32 %v227_v18 }
  0x5a   :  { %538 = vpow2.f32 %v233_v19 }
  0x5b   :  { %540 = vpow2.f32 %v239_v20 }
  0x5f   :  { %v523_v27 = vpop.eup %522 }
  0x60   :  { %v525_v31 = vpop.eup %524  ;;  %v302_v32 = vmul.f32 %v523_v27, %v501_v21  ;;  %v246_v34 = vmul.f32 %v523_v27, %v496_v22  ;;  %v357_v36 = vmul.f32 %v523_v27, %v506_v23 }
  0x61   :  { %v527_v37 = vpop.eup %526  ;;  %v309_v38 = vmul.f32 %v525_v31, %v502_v24  ;;  %v253_v39 = vmul.f32 %v525_v31, %v497_v25  ;;  %v364_v40 = vmul.f32 %v525_v31, %v507_v26 }
  0x62   :  { %v529_v41 = vpop.eup %528  ;;  %v318_v42 = vmul.f32 %v527_v37, %v503_v28  ;;  %v262_v44 = vmul.f32 %v527_v37, %v498_v29  ;;  %v373_v46 = vmul.f32 %v527_v37, %v508_v30 }
  0x63   :  { %v531_v47 = vpop.eup %530  ;;  %v311_v48 = vadd.f32 %v309_v38, %v302_v32  ;;  %v327_v49 = vmul.f32 %v529_v41, %v504_v33  ;;  %v255_v50 = vadd.f32 %v253_v39, %v246_v34  ;;  %v271_v51 = vmul.f32 %v529_v41, %v499_v35 }
  0x64   :  { %v366_v54 = vadd.f32 %v364_v40, %v357_v36  ;;  %v336_v56 = vmul.f32 %v531_v47, %v505_v43  ;;  %v280_v59 = vmul.f32 %v531_v47, %v500_v45  ;;  %v533_v60 = vpop.eup %532  ;;  %v382_v62 = vmul.f32 %v529_v41, %v509_v52 }
  0x65   :  { %v320_v55 = vadd.f32 %v318_v42, %v311_v48  ;;  %v264_v58 = vadd.f32 %v262_v44, %v255_v50  ;;  %v391_v63 = vmul.f32 %v531_v47, %v510_v53  ;;  %v535_v0 = vpop.eup %534  ;;  %v303_v3 = vmul.f32 %v533_v60, %v501_v21 }
  0x66   :  { %v375_v61 = vadd.f32 %v373_v46, %v366_v54  ;;  %v247_v4 = vmul.f32 %v533_v60, %v496_v22  ;;  %v537_v5 = vpop.eup %536  ;;  %v310_v6 = vmul.f32 %v535_v0, %v502_v24  ;;  %v254_v7 = vmul.f32 %v535_v0, %v497_v25 }
  0x67   :  { %v329_v1 = vadd.f32 %v327_v49, %v320_v55  ;;  %v273_v2 = vadd.f32 %v271_v51, %v264_v58  ;;  %v358_v8 = vmul.f32 %v533_v60, %v506_v23  ;;  %v365_v9 = vmul.f32 %v535_v0, %v507_v26  ;;  %v539_v11 = vpop.eup %538 }
  0x68   :  { %v319_v14 = vmul.f32 %v537_v5, %v503_v28  ;;  %v263_v15 = vmul.f32 %v537_v5, %v498_v29  ;;  %v541_v16 = vpop.eup %540  ;;  %v312_v17 = vadd.f32 %v310_v6, %v303_v3  ;;  %v328_v18 = vmul.f32 %v539_v11, %v504_v33 }
  0x69   :  { %v338_v12 = vadd.f32 %v336_v56, %v329_v1  ;;  %v282_v13 = vadd.f32 %v280_v59, %v273_v2  ;;  %v256_v19 = vadd.f32 %v254_v7, %v247_v4  ;;  %v272_v20 = vmul.f32 %v539_v11, %v499_v35 }
  0x6a   :  { %v337_v27 = vmul.f32 %v541_v16, %v505_v43  ;;  %v281_v31 = vmul.f32 %v541_v16, %v500_v45  ;;  %v367_v21 = vadd.f32 %v365_v9, %v358_v8  ;;  %v321_v22 = vadd.f32 %v319_v14, %v312_v17 }
  0x6b   :  { %542 = vlog2.f32 %v338_v12  ;;  %v265_v24 = vadd.f32 %v263_v15, %v256_v19  ;;  %v374_v25 = vmul.f32 %v537_v5, %v508_v30  ;;  %v383_v23 = vmul.f32 %v539_v11, %v509_v52 }
  0x6c   :  { %544 = vlog2.f32 %v282_v13  ;;  %v384_v26 = vadd.f32 %v382_v62, %v375_v61  ;;  %v330_v32 = vadd.f32 %v328_v18, %v321_v22  ;;  %v392_v28 = vmul.f32 %v541_v16, %v510_v53 }
  0x6d   :  { %v274_v34 = vadd.f32 %v272_v20, %v265_v24  ;;  %v376_v36 = vadd.f32 %v374_v25, %v367_v21  ;;  %v511_v20 = vld [vmem:[%s808_s5] ss:$0 sm:$0xff]  ;;  %v513_v24 = vld [vmem:[%s808_s5 + $0x2] ss:$0 sm:$0xff] }
  0x6e   :  { %v393_v29 = vadd.f32 %v391_v63, %v384_v26  ;;  %v339_v37 = vadd.f32 %v337_v27, %v330_v32  ;;  %v512_v27 = vld [vmem:[%s808_s5 + $0x1] ss:$0 sm:$0xff]  ;;  %s705_s5 = smov [#allocation11]  }
  0x6f   :  { %v283_v38 = vadd.f32 %v281_v31, %v274_v34  ;;  %v385_v33 = vadd.f32 %v383_v23, %v376_v36  ;;  %s467_s25 = sshll.u32 %s705_s5, 4  ;;  %s468_s25 = int_to_ptr.vmem [resolvable:$true] %s467_s25 }
  0x70   :  { %546 = vlog2.f32 %v393_v29  ;;  %s670_s26 = scalar_lea.vmem %s468_s25, 256  ;;  %p675_p12 = scmp.lt.s32.totalorder %s468_s25, %s468_s25 }
  0x71   :  { %548 = vlog2.f32 %v339_v37  ;;  %v394_v35 = vadd.f32 %v392_v28, %v385_v33  ;;  %p671_p11 = scmp.ne.s32.totalorder %s468_s25, %s670_s26  ;;  %p676_p13 = scmp.lt.s32.totalorder %s670_s26, %s670_s26 }
  0x72   :  { %550 = vlog2.f32 %v283_v38 }
  0x73   :  { %552 = vlog2.f32 %v394_v35  ;;  %p677_p0 = por %p676_p13, %p675_p12 }
  0x75   :  { %p678_p1 = pnand %p677_p0, %p671_p11 }
  0x78   :  { %v543_v39 = vpop.eup %542 }
  0x79   :  { %v545_v40 = vpop.eup %544  ;;  %v341_v41 = vmul.f32 0.6931472, %v543_v39 }
  0x7a   :  { %v285_v30 = vmul.f32 0.6931472, %v545_v40 }
  0x7b   :  { %v344_v42 = vadd.f32 %v341_v41, %v762_v57 }
  0x7c   :  { %v288_v43 = vadd.f32 %v285_v30, %v762_v57 }
  0x7d   :  { %v346_v44 = vsel %vm290_vm0, %v344_v42, 0.0  ;;  %v547_v45 = vpop.eup %546 }
  0x7e   :  { %347 = vadd.xlane.f32.xlu1 %v346_v44  ;;  %v291_v46 = vsel %vm290_vm0, %v288_v43, 0.0  ;;  %v549_v47 = vpop.eup %548  ;;  %v396_v48 = vmul.f32 0.6931472, %v547_v45 }
  0x7f   :  { %292 = vadd.xlane.f32.xlu0 %v291_v46  ;;  %v551_v49 = vpop.eup %550  ;;  %v343_v50 = vmul.f32 0.6931472, %v549_v47 }
  0x80   :  { %v553_v51 = vpop.eup %552  ;;  %v287_v52 = vmul.f32 0.6931472, %v551_v49  ;;  %v399_v56 = vadd.f32 %v396_v48, %v762_v57 }
  0x81   :  { %v345_v53 = vadd.f32 %v343_v50, %v769_v10  ;;  %v398_v54 = vmul.f32 0.6931472, %v553_v51 }
  0x82   :  { %v289_v55 = vadd.f32 %v287_v52, %v769_v10  ;;  %v401_v62 = vsel %vm290_vm0, %v399_v56, 0.0 }
  0x83   :  { %v349_v58 = vsel %vm290_vm0, %v345_v53, 0.0  ;;  %v400_v59 = vadd.f32 %v398_v54, %v769_v10 }
  0x84   :  { %350 = vadd.xlane.f32.xlu1 %v349_v58  ;;  %v294_v60 = vsel %vm290_vm0, %v289_v55, 0.0 }
  0x85   :  { %295 = vadd.xlane.f32.xlu0 %v294_v60  ;;  %v404_v61 = vsel %vm290_vm0, %v400_v59, 0.0 }
  0x88   :  { %405 = vadd.xlane.f32.xlu1 %v404_v61 }
  0x89   :  { %402 = vadd.xlane.f32.xlu0 %v401_v62 }
 0x107   :  { %v348_v63 = vpop.xlane.xlu1 %347 }
 0x108   :  { %v293_v0 = vpop.xlane.xlu0 %292 }
 0x109   :  { %v407_v57 = vmax.f32 %v293_v0, %v348_v63 }
 0x10d   :  { %v351_v1 = vpop.xlane.xlu1 %350 }
 0x10e   :  { %v296_v2 = vpop.xlane.xlu0 %295 }
 0x10f   :  { %v408_v3 = vmax.f32 %v296_v2, %v351_v1 }
 0x111   :  { %v406_v4 = vpop.xlane.xlu1 %405 }
 0x112   :  { %v410_v5 = vmax.f32 %v408_v3, %v406_v4  ;;  %v403_v6 = vpop.xlane.xlu0 %402 }
 0x113   :  { %v409_v10 = vmax.f32 %v407_v57, %v403_v6 }
 0x114   :  { %v412_v7 = vsub.f32 %v296_v2, %v410_v5  ;;  %v425_v8 = vsub.f32 %v351_v1, %v410_v5  ;;  %v440_v9 = vsub.f32 %v406_v4, %v410_v5 }
 0x115   :  { %v411_v11 = vsub.f32 %v293_v0, %v409_v10  ;;  %v424_v12 = vsub.f32 %v348_v63, %v409_v10  ;;  %v439_v13 = vsub.f32 %v403_v6, %v409_v10 }
 0x116   :  { %v415_v14 = vmul.f32 1.442695, %v412_v7  ;;  %v428_v15 = vmul.f32 1.442695, %v425_v8  ;;  %v443_v16 = vmul.f32 1.442695, %v440_v9 }
 0x117   :  { %v413_v17 = vmul.f32 1.442695, %v411_v11  ;;  %v426_v18 = vmul.f32 1.442695, %v424_v12  ;;  %v441_v19 = vmul.f32 1.442695, %v439_v13 }
 0x118   :  { %554 = vpow2.f32 %v415_v14 }
 0x119   :  { %556 = vpow2.f32 %v428_v15 }
 0x11a   :  { %558 = vpow2.f32 %v443_v16 }
 0x11b   :  { %560 = vpow2.f32 %v413_v17 }
 0x11c   :  { %562 = vpow2.f32 %v426_v18 }
 0x11d   :  { %564 = vpow2.f32 %v441_v19 }
 0x125   :  { %v555_v31 = vpop.eup %554 }
 0x126   :  { %v557_v21 = vpop.eup %556  ;;  %v423_v22 = vmul.f32 %v555_v31, %v511_v20 }
 0x127   :  { %v559_v25 = vpop.eup %558  ;;  %v436_v23 = vmul.f32 %v557_v21, %v512_v27 }
 0x128   :  { %v561_v26 = vpop.eup %560  ;;  %v451_v28 = vmul.f32 %v559_v25, %v513_v24 }
 0x129   :  { %v563_v32 = vpop.eup %562  ;;  %v422_v34 = vmul.f32 %v561_v26, %v511_v20  ;;  %v438_v36 = vadd.f32 %v436_v23, %v423_v22 }
 0x12a   :  { %v565_v29 = vpop.eup %564  ;;  %v435_v37 = vmul.f32 %v563_v32, %v512_v27 }
 0x12b   :  { %v453_v38 = vadd.f32 %v451_v28, %v438_v36  ;;  %v450_v35 = vmul.f32 %v565_v29, %v513_v24 }
 0x12c   :  { %v437_v33 = vadd.f32 %v435_v37, %v422_v34 }
 0x12d   :  { %566 = vlog2.f32 %v453_v38 }
 0x12e   :  { %v452_v39 = vadd.f32 %v450_v35, %v437_v33 }
 0x130   :  { %568 = vlog2.f32 %v452_v39 }
 0x13a   :  { %v567_v40 = vpop.eup %566 }
 0x13b   :  { %v457_v41 = vmul.f32 0.6931472, %v567_v40 }
 0x13d   :  { %v569_v30 = vpop.eup %568  ;;  %v459_v42 = vadd.f32 %v457_v41, %v410_v5 }
 0x13e   :  { %v455_v43 = vmul.f32 0.6931472, %v569_v30 }
 0x13f   :  { %461 = vst [vmem:[#allocation11 + $0x8] sm:$0xff] %v459_v42 }
 0x140   :  { %v458_v44 = vadd.f32 %v455_v43, %v409_v10 }
 0x142   :  { %460 = vst [vmem:[#allocation11] sm:$0xff] %v458_v44 }
 0x143   :  { %681 = shalt.err (!%p678_p1)
}
 0x144   :  { %473 = dma.vmem_to_hbm [thread:$0]  %s468_s25, 256, %s809_s6, [#allocation4], %s701_s1, %s701_s1, %s702_s10  }
 0x145   :  { %696 = dma.done.wait [#allocation4], 256  }
 0x146   :  { %697 = vsyncadd [#allocation4], 4294967040 }
 0x147   :  { %477 = vsyncpa [#allocation3], 1 }
 0x148   :  { %478 = vsyncpa [#allocation6], 1 }
 0x149   :  { %479 = vsyncpa [#allocation9], 1 }
 0x14a   :  { %480 = vsyncpa [#allocation4], 1 }

</bundles_post_ra>
